<compile_context>
chip_gen: v7x
topology: tpu7x:2x2x1
jax: 0.10.0
libtpu: 0.0.40
codegen_flags: <defaults>
</compile_context>

<pallas_src>
import functools

import jax
import jax.numpy as jnp
from jax.experimental import pallas as pl
from jax.experimental.pallas import tpu as pltpu


# ----------------------------- in-kernel helpers -----------------------------

def _layernorm(x, g, b, eps):
    # PyTorch LayerNorm: biased variance over last dim, f32 statistics.
    mu = jnp.mean(x, axis=-1, keepdims=True)
    xc = x - mu
    var = jnp.mean(xc * xc, axis=-1, keepdims=True)
    inv = jax.lax.rsqrt(var + eps)
    return xc * inv * g + b


def _gelu_tanh(x):
    # nn.functional.gelu(..., approximate='tanh')
    c = 0.7978845608028654  # sqrt(2/pi)
    return 0.5 * x * (1.0 + jnp.tanh(c * (x + 0.044715 * x * x * x)))


def _softmax_eup(scores):
    # max/sum stats in f32; division replaced by EUP approximate reciprocal.
    m = jnp.max(scores, axis=-1, keepdims=True)
    e = jnp.exp(scores - m)
    denom = jnp.sum(e, axis=-1, keepdims=True)
    return e * pl.reciprocal(denom, approx=True)


# --------------------------------- kernels -----------------------------------

def patch_embed_kernel(patches_ref, w_ref, b_ref, pos_ref, out_ref):
    # patches_ref: (1, N, Kp) bf16   w_ref: (Kp, D) bf16   b/pos: f32
    x = patches_ref[0]
    y = jnp.dot(x, w_ref[...], preferred_element_type=jnp.float32)
    out_ref[0] = y + b_ref[...] + pos_ref[...]


def encoder_stack_kernel(x_ref, ln1g, ln1b, wqkv, bqkv, wo, bo,
                         ln2g, ln2b, w1, b1, w2, b2, postg, postb,
                         out_ref, h_ref,
                         *, num_heads, head_dim, embed_dim, eps, scale,
                         mlp_chunk, n_mlp_chunks):
    l = pl.program_id(1)
    D = embed_dim

    # Load the input hidden state once (layer 0); afterwards it stays resident
    # in the VMEM scratch across the whole layer stack for this batch element.
    @pl.when(l == 0)
    def _():
        h_ref[...] = x_ref[0]

    x = h_ref[...]                                         # (S, D) f32

    # ---- layer_norm1 + self attention (bf16 matmuls, f32 accum/stats) ----
    h = _layernorm(x, ln1g[0], ln1b[0], eps).astype(jnp.bfloat16)
    qkv = jnp.dot(h, wqkv[0], preferred_element_type=jnp.float32) + bqkv[0]
    q = qkv[:, 0:D]
    k = qkv[:, D:2 * D]
    v = qkv[:, 2 * D:3 * D]
    wo_heads = wo[0]                                       # (nh, hd, D) bf16

    attn = jnp.zeros_like(x)                               # (S, D) f32 acc
    for hh in range(num_heads):                            # static unrolled
        s0 = hh * head_dim
        qh = q[:, s0:s0 + head_dim].astype(jnp.bfloat16)
        kh = k[:, s0:s0 + head_dim].astype(jnp.bfloat16)
        vh = v[:, s0:s0 + head_dim].astype(jnp.bfloat16)
        # Contract the last dims directly: no explicit kh.T materialization.
        scores = jax.lax.dot_general(
            qh, kh, (((1,), (1,)), ((), ())),
            preferred_element_type=jnp.float32) * scale
        probs = _softmax_eup(scores)                       # f32
        ctx = jnp.dot(probs.astype(jnp.bfloat16), vh,
                      preferred_element_type=jnp.float32)
        # Accumulate the output projection per head (no concat of head outs).
        attn = attn + jnp.dot(ctx.astype(jnp.bfloat16), wo_heads[hh],
                              preferred_element_type=jnp.float32)
    # TODO(synk): attention dropout omitted (p=0.0 and eval mode -> identity).
    x = x + attn + bo[0]

    # ---- layer_norm2 + MLP (chunked over the intermediate dimension) ----
    h2 = _layernorm(x, ln2g[0], ln2b[0], eps).astype(jnp.bfloat16)
    w1_v = w1[0]                                           # (D, I) bf16
    w2_v = w2[0]                                           # (I, D) bf16
    b1_v = b1[0]                                           # (1, I) f32
    mlp = jnp.zeros_like(x)                                # (S, D) f32 acc
    for c in range(n_mlp_chunks):                          # static unrolled
        c0 = c * mlp_chunk
        m = jnp.dot(h2, w1_v[:, c0:c0 + mlp_chunk],
                    preferred_element_type=jnp.float32)
        m = m + b1_v[:, c0:c0 + mlp_chunk]
        m = _gelu_tanh(m).astype(jnp.bfloat16)
        mlp = mlp + jnp.dot(m, w2_v[c0:c0 + mlp_chunk, :],
                            preferred_element_type=jnp.float32)
    x = x + mlp + b2[0]

    h_ref[...] = x                                         # carry to layer l+1

    # ---- fused post_layernorm, written once at the last layer ----
    @pl.when(l == pl.num_programs(1) - 1)
    def _():
        out_ref[0] = _layernorm(x, postg[...], postb[...], eps)


# --------------------------------- wrappers ----------------------------------

def _mlp_chunk(intermediate, target=1024):
    """Largest divisor of the intermediate dim that is <= target."""
    if intermediate <= target:
        return intermediate
    for c in range(target, 0, -1):
        if intermediate % c == 0:
            return c
    return intermediate


def patch_embed(patches, w, b, pos):
    B, N, K = patches.shape
    D = w.shape[1]
    Kp = ((K + 127) // 128) * 128          # unmasked MXU contraction dim
    if Kp != K:
        patches = jnp.pad(patches, ((0, 0), (0, 0), (0, Kp - K)))
        w = jnp.pad(w, ((0, Kp - K), (0, 0)))
    return pl.pallas_call(
        patch_embed_kernel,
        out_shape=jax.ShapeDtypeStruct((B, N, D), jnp.float32),
        grid=(B,),
        in_specs=[pl.BlockSpec((1, N, Kp), lambda i: (i, 0, 0)),
                  pl.BlockSpec((Kp, D), lambda i: (0, 0)),
                  pl.BlockSpec((1, D), lambda i: (0, 0)),
                  pl.BlockSpec((N, D), lambda i: (0, 0))],
        out_specs=pl.BlockSpec((1, N, D), lambda i: (i, 0, 0)),
        compiler_params=pltpu.CompilerParams(
            dimension_semantics=("parallel",)),
    )(patches, w, b, pos)


def encoder_stack(x, params, cfg):
    """All encoder layers + post layernorm fused into one pipelined pallas_call."""
    B, S, D = x.shape
    L = cfg["num_hidden_layers"]
    I = cfg["intermediate_size"]
    nh = cfg["num_attention_heads"]
    hd = D // nh
    chunk = _mlp_chunk(I)

    kern = functools.partial(
        encoder_stack_kernel,
        num_heads=nh,
        head_dim=hd,
        embed_dim=D,
        eps=cfg["layer_norm_eps"],
        scale=hd ** -0.5,
        mlp_chunk=chunk,
        n_mlp_chunks=I // chunk,
    )

    # Reshape Wo to a per-head layout so each head slab is a leading-axis pick.
    wo_heads = params["wo"].reshape(L, nh, hd, D)
    stacked = [params["ln1_g"], params["ln1_b"],
               params["wqkv"], params["bqkv"], wo_heads, params["bo"],
               params["ln2_g"], params["ln2_b"],
               params["w1"], params["b1"], params["w2"], params["b2"]]

    def per_layer_spec(a):
        nd = a.ndim
        return pl.BlockSpec((1,) + a.shape[1:],
                            lambda b, l, _nd=nd: (l,) + (0,) * (_nd - 1))

    in_specs = ([pl.BlockSpec((1, S, D), lambda b, l: (b, 0, 0))]
                + [per_layer_spec(a) for a in stacked]
                + [pl.BlockSpec((1, D), lambda b, l: (0, 0)),
                   pl.BlockSpec((1, D), lambda b, l: (0, 0))])

    return pl.pallas_call(
        kern,
        out_shape=jax.ShapeDtypeStruct((B, S, D), jnp.float32),
        grid=(B, L),
        in_specs=in_specs,
        out_specs=pl.BlockSpec((1, S, D), lambda b, l: (b, 0, 0)),
        scratch_shapes=[pltpu.VMEM((S, D), jnp.float32)],
        compiler_params=pltpu.CompilerParams(
            dimension_semantics=("parallel", "arbitrary"),
            vmem_limit_bytes=64 * 1024 * 1024),
    )(x, *stacked, params["post_g"], params["post_b"])


def siglip_vision_transformer(pixel_values, params, cfg):
    B, C, H, W = pixel_values.shape
    P = cfg["patch_size"]
    nH, nW = H // P, W // P
    N = nH * nW
    # Glue: extract non-overlapping patches (== stride-P valid conv), flatten
    # each patch in (C, ph, pw) order to match the flattened Conv2d weight.
    patches = pixel_values.reshape(B, C, nH, P, nW, P)
    patches = patches.transpose(0, 2, 4, 1, 3, 5).reshape(B, N, C * P * P)
    patches = patches.astype(jnp.bfloat16)

    x = patch_embed(patches, params["patch_w"], params["patch_b"], params["pos"])
    x = encoder_stack(x, params, cfg)        # all layers + post LN, one kernel
    return x


# --------------------------- deterministic params ----------------------------

def init_params(key, cfg):
    D = cfg["hidden_size"]
    I = cfg["intermediate_size"]
    C = cfg["num_channels"]
    P = cfg["patch_size"]
    L = cfg["num_hidden_layers"]
    N = (cfg["image_size"] // P) ** 2
    bf16 = jnp.bfloat16

    def nrm(k, shape, s=0.02):
        return jax.random.normal(k, shape, jnp.float32) * s

    keys = jax.random.split(key, 6)
    params = {}
    patch_w_torch = nrm(keys[0], (D, C, P, P))                 # Conv2d layout
    params["patch_w"] = patch_w_torch.reshape(D, C * P * P).T.astype(bf16)
    params["patch_b"] = nrm(keys[1], (1, D))
    params["pos"] = nrm(keys[2], (N, D))
    params["post_g"] = 1.0 + nrm(keys[3], (1, D))
    params["post_b"] = jnp.zeros((1, D), jnp.float32)

    # Per-layer weights stacked on a leading L axis; matmul weights in bf16,
    # biases / LN params in f32. (in, out) layout, i.e. transposed vs torch.
    lk = jax.random.split(keys[4], 16)
    params["ln1_g"] = 1.0 + nrm(lk[0], (L, 1, D))
    params["ln1_b"] = nrm(lk[1], (L, 1, D))
    wq = nrm(lk[2], (L, D, D))
    bq = nrm(lk[3], (L, 1, D))
    wk = nrm(lk[4], (L, D, D))
    bk = nrm(lk[5], (L, 1, D))
    wv = nrm(lk[6], (L, D, D))
    bv = nrm(lk[7], (L, 1, D))
    # Fused QKV projection: one (D, 3D) matmul per layer inside the kernel.
    params["wqkv"] = jnp.concatenate([wq, wk, wv], axis=-1).astype(bf16)
    params["bqkv"] = jnp.concatenate([bq, bk, bv], axis=-1)
    params["wo"] = nrm(lk[8], (L, D, D)).astype(bf16)
    params["bo"] = nrm(lk[9], (L, 1, D))
    params["ln2_g"] = 1.0 + nrm(lk[10], (L, 1, D))
    params["ln2_b"] = nrm(lk[11], (L, 1, D))
    params["w1"] = nrm(lk[12], (L, D, I)).astype(bf16)
    params["b1"] = nrm(lk[13], (L, 1, I))
    params["w2"] = nrm(lk[14], (L, I, D)).astype(bf16)
    params["b2"] = nrm(lk[15], (L, 1, D))
    return params


# ------------------------------------ main ------------------------------------

if __name__ == "__main__":
    cfg = dict(
        hidden_size=32,
        intermediate_size=64,
        num_hidden_layers=2,
        num_attention_heads=4,
        num_channels=3,
        image_size=16,
        patch_size=8,
        layer_norm_eps=1e-6,
    )
    B = 2

    key = jax.random.PRNGKey(0)
    k_params, k_pix = jax.random.split(key)
    params = init_params(k_params, cfg)
    pixel_values = jax.random.normal(
        k_pix, (B, cfg["num_channels"], cfg["image_size"], cfg["image_size"]),
        jnp.float32)

    out = siglip_vision_transformer(pixel_values, params, cfg)
    out = jax.block_until_ready(out)

    N = (cfg["image_size"] // cfg["patch_size"]) ** 2
    assert out.shape == (B, N, cfg["hidden_size"]), out.shape
    assert bool(jnp.all(jnp.isfinite(out)))
    print("KERNEL_OK")
</pallas_src>

<mosaic_0001>
module attributes {stable_mosaic.version = 11 : i64} {
  func.func @patch_embed_kernel(%arg0: i32, %arg1: memref<1x4x256xbf16, #tpu.memory_space<vmem>>, %arg2: memref<256x32xbf16, #tpu.memory_space<vmem>>, %arg3: memref<1x32xf32, #tpu.memory_space<vmem>>, %arg4: memref<4x32xf32, #tpu.memory_space<vmem>>, %arg5: memref<1x4x32xf32, #tpu.memory_space<vmem>>) attributes {dimension_semantics = [#tpu.dimension_semantics<parallel>], iteration_bounds = array<i64: 2>, scalar_prefetch = 0 : i64, scratch_operands = 0 : i64, tpu.core_type = #tpu.core_type<tc>, window_params = [{transform_indices = @transform_0, window_bounds = array<i64: 1, 4, 256>}, {pipeline_mode = #tpu.pipeline_mode<synchronous>, transform_indices = @transform_1, window_bounds = array<i64: 256, 32>}, {pipeline_mode = #tpu.pipeline_mode<synchronous>, transform_indices = @transform_2, window_bounds = array<i64: 1, 32>}, {pipeline_mode = #tpu.pipeline_mode<synchronous>, transform_indices = @transform_3, window_bounds = array<i64: 4, 32>}, {transform_indices = @transform_4, window_bounds = array<i64: 1, 4, 32>}]} {
    %c0 = arith.constant 0 : index
    %c0_0 = arith.constant 0 : index
    %c0_1 = arith.constant 0 : index
    %0 = vector.load %arg1[%c0, %c0_0, %c0_1] : memref<1x4x256xbf16, #tpu.memory_space<vmem>>, vector<1x4x256xbf16>
    %1 = vector.shape_cast %0 : vector<1x4x256xbf16> to vector<4x256xbf16>
    %c0_2 = arith.constant 0 : index
    %c0_3 = arith.constant 0 : index
    %2 = vector.load %arg2[%c0_2, %c0_3] : memref<256x32xbf16, #tpu.memory_space<vmem>>, vector<256x32xbf16>
    %cst = arith.constant dense<0.000000e+00> : vector<4x32xf32>
    %3 = tpu.matmul %1, %2, %cst {dimension_numbers = #tpu.dot_dimension_numbers<[1], [0], [0], [1], [0, 0, 1, 1], [], []>} : vector<4x256xbf16>, vector<256x32xbf16>, vector<4x32xf32> -> vector<4x32xf32>
    %c0_4 = arith.constant 0 : index
    %c0_5 = arith.constant 0 : index
    %4 = vector.load %arg3[%c0_4, %c0_5] : memref<1x32xf32, #tpu.memory_space<vmem>>, vector<1x32xf32>
    %5 = vector.broadcast %4 : vector<1x32xf32> to vector<4x32xf32>
    %6 = arith.addf %3, %5 : vector<4x32xf32>
    %c0_6 = arith.constant 0 : index
    %c0_7 = arith.constant 0 : index
    %7 = vector.load %arg4[%c0_6, %c0_7] : memref<4x32xf32, #tpu.memory_space<vmem>>, vector<4x32xf32>
    %8 = arith.addf %6, %7 : vector<4x32xf32>
    %c0_8 = arith.constant 0 : index
    %c0_9 = arith.constant 0 : index
    %c0_10 = arith.constant 0 : index
    %9 = vector.load %arg5[%c0_8, %c0_9, %c0_10] : memref<1x4x32xf32, #tpu.memory_space<vmem>>, vector<1x4x32xf32>
    %10 = vector.shape_cast %9 : vector<1x4x32xf32> to vector<4x32xf32>
    %11 = vector.shape_cast %8 : vector<4x32xf32> to vector<1x4x32xf32>
    tpu.vector_store %arg5[%c0_8, %c0_9, %c0_10], %11 {strides = array<i32>} : memref<1x4x32xf32, #tpu.memory_space<vmem>>, vector<1x4x32xf32>,
    return
  }
  func.func @transform_0(%arg0: i32) -> (i32, i32, i32) {
    %c0_i32 = arith.constant 0 : i32
    %c0_i32_0 = arith.constant 0 : i32
    %c0_i32_1 = arith.constant 0 : i32
    return %arg0, %c0_i32, %c0_i32_0 : i32, i32, i32
  }
  func.func @transform_1(%arg0: i32) -> (i32, i32) {
    %c0_i32 = arith.constant 0 : i32
    %c0_i32_0 = arith.constant 0 : i32
    %c0_i32_1 = arith.constant 0 : i32
    return %c0_i32, %c0_i32_0 : i32, i32
  }
  func.func @transform_2(%arg0: i32) -> (i32, i32) {
    %c0_i32 = arith.constant 0 : i32
    %c0_i32_0 = arith.constant 0 : i32
    %c0_i32_1 = arith.constant 0 : i32
    return %c0_i32, %c0_i32_0 : i32, i32
  }
  func.func @transform_3(%arg0: i32) -> (i32, i32) {
    %c0_i32 = arith.constant 0 : i32
    %c0_i32_0 = arith.constant 0 : i32
    %c0_i32_1 = arith.constant 0 : i32
    return %c0_i32, %c0_i32_0 : i32, i32
  }
  func.func @transform_4(%arg0: i32) -> (i32, i32, i32) {
    %c0_i32 = arith.constant 0 : i32
    %c0_i32_0 = arith.constant 0 : i32
    %c0_i32_1 = arith.constant 0 : i32
    return %arg0, %c0_i32, %c0_i32_0 : i32, i32, i32
  }
}

</mosaic_0001>

<bundles_post_ra>
// kernel: tpu_custom_call.1
= control target key start
LH: loop header
LB: loop body
LE: loop exit
PB: predicated region body
PF: predicated region fallthrough
CT: control target
= control target key end

     0   :  { %9 = vsyncpa [#allocation3], 0  ;;  %s812_s0 = inlined_call_operand.vmem [shape: bf16[2,4,256], index: 0, kind: input, shape index: {}]   ;;  %s813_s1 = inlined_call_operand.vmem [shape: bf16[256,32], index: 1, kind: input, shape index: {}]   ;;  %s814_s2 = inlined_call_operand.vmem [shape: f32[1,32], index: 2, kind: input, shape index: {}]   ;;  %s815_s3 = inlined_call_operand.vmem [shape: f32[4,32], index: 3, kind: input, shape index: {}]   ;;  %s816_s4 = inlined_call_operand.hbm [shape: f32[2,4,32], index: 4, kind: output, shape index: {}]  }
   0x1   :  { %11 = vsyncpa [#allocation3 + $0x1], 0  ;;  %s658_s15 = smov 0   ;;  %s660_s16 = smov 0  }
   0x2   :  { %s662_s17 = smov 0   ;;  %s664_s18 = smov 0  }
   0x3 LB: > { %s679_s19 = sadd.s32 4294967295, %s630_s18   ;;  %s461_s20 = sadd.s32 4294967294, %s630_s18   ;;  %s630_s18 = sphi %s664_s18, %s822_s18   ;;  %s626_s17 = sphi %s662_s17, %s821_s17   ;;  %s622_s16 = sphi %s660_s16, %s820_s16   ;;  %s618_s15 = sphi %s658_s15, %s819_s15  }
   0x4   : > { %s683_s21 = sadd.s32 1, %s630_s18   ;;  %s113_s22 = sadd.s32 1, %s626_s17 }
   0x5   : > { %s110_s23 = ssub.s32 %s630_s18, %s683_s21  ;;  %p123_p0 = scmp.ne.s32.totalorder %s626_s17, %s622_s16 }
   0x6   : > { %p111_p1 = scmp.eq.s32.totalorder %s110_s23, 0  ;;  %p124_p2 = scmp.eq.s32.totalorder %s679_s19, 1 }
   0x7   : > { %p129_p3 = scmp.ne.s32.totalorder %s622_s16, %s618_s15  ;;  %p130_p4 = scmp.eq.s32.totalorder %s461_s20, 1 }
   0x8   : > { %s694_s24 = scalar_select %p111_p1, %s626_s17, %s113_s22  }
   0x9   : > { %p696_p5 = por %p124_p2, %p123_p0  ;;  %p700_p6 = por %p130_p4, %p129_p3 }
   0xa   : > { %p464_p7 = scmp.ge.s32.totalorder %s630_s18, 1  ;;  %p165_p8 = scmp.lt.s32.totalorder %s630_s18, 3 }
   0xc   : > { %p166_p9 = pnand %p464_p7, %p165_p8 }
   0xd   : > { %v552_v0 = vld [vmem:[%s813_s1 + $0x40] sm:$0xff] (!%p166_p9)   ;;  %v554_v2 = vld [vmem:[%s813_s1 + $0x48] sm:$0xff] (!%p166_p9)   ;;  %p191_p10 = scmp.lt.s32.totalorder (!%p166_p9), %s679_s19, 1  ;;  %v556_v4 = vld [vmem:[%s813_s1 + $0x50] sm:$0xff] (!%p166_p9)   ;;  %s188_s30 = sand.u32 (!%p166_p9), 1, %s622_s16   ;;  %vm386_vm0 = vcmask (!%p166_p9), 257024  }
   0xe   : > { %169 = sbr.rel (%p166_p9) target bundleno = 279 (0x117), region = 36  ;;  %v553_v1 = vld [vmem:[%s813_s1] sm:$0xff] (!%p166_p9)   ;;  %491 = vmatprep.subr.bf16.mxu0 (!%p166_p9), %v552_v0  ;;  %v555_v3 = vld [vmem:[%s813_s1 + $0x8] sm:$0xff] (!%p166_p9)   ;;  %v557_v5 = vld [vmem:[%s813_s1 + $0x10] sm:$0xff] (!%p166_p9)   ;;  %s465_s5 = sshll.u32 (!%p166_p9), %s188_s30, 2 }
   0xf   : > { %492 = vmatpush3.bf16.msra.mxu0 (!%p166_p9), %v553_v1  ;;  %v558_v6 = vld [vmem:[%s813_s1 + $0x58] sm:$0xff] (!%p166_p9)   ;;  %v560_v8 = vld [vmem:[%s813_s1 + $0x60] sm:$0xff] (!%p166_p9)   ;;  %v562_v10 = vld [vmem:[%s813_s1 + $0x68] sm:$0xff] (!%p166_p9)   ;;  %s487_s10 = sshll.u32 (!%p166_p9), %s679_s19, 6 }
  0x10   : > { %493 = vmatprep.subr.bf16.mxu0 (!%p166_p9), %v554_v2  ;;  %v559_v7 = vld [vmem:[%s813_s1 + $0x18] sm:$0xff] (!%p166_p9)   ;;  %v561_v9 = vld [vmem:[%s813_s1 + $0x20] sm:$0xff] (!%p166_p9)   ;;  %v563_v13 = vld [vmem:[%s813_s1 + $0x28] sm:$0xff] (!%p166_p9)   ;;  %s770_s20 = scalar_lea.hbm (!%p166_p9), %s816_s4, %s487_s10 }
  0x11   : > { %v564_v14 = vld [vmem:[%s813_s1 + $0x70] sm:$0xff] (!%p166_p9)   ;;  %v566_v16 = vld [vmem:[%s813_s1 + $0x78] sm:$0xff] (!%p166_p9)   ;;  %v468_v19 = vld [vmem:[%s814_s2] ss:$0 sm:$0xff] (!%p166_p9) }
  0x12   : > { %v565_v15 = vld [vmem:[%s813_s1 + $0x30] sm:$0xff] (!%p166_p9)   ;;  %v567_v17 = vld [vmem:[%s813_s1 + $0x38] sm:$0xff] (!%p166_p9)   ;;  %v384_v23 = vld [vmem:[%s815_s3] sm:$0xf] (!%p166_p9) }
  0x13   : > { %494 = vmatpush3.bf16.msra.mxu0 (!%p166_p9), %v555_v3 }
  0x14   : > { %495 = vmatprep.subr.bf16.mxu0 (!%p166_p9), %v556_v4 }
  0x15   : > { %s192_s11 = scalar_select %p191_p10, %s679_s19, 1 }
  0x16   : > { %s632_s19 = smov [#allocation2]  }
  0x17   : > { %s490_s22 = sshll.u32 %s192_s11, 2  ;;  %496 = vmatpush3.bf16.msra.mxu0 %v557_v5  ;;  %s190_s11 = scalar_lea.vmem [#allocation2], %s465_s5 }
  0x18   : > { %497 = vmatprep.subr.bf16.mxu0 %v558_v6  ;;  %s195_s6 = scalar_lea.vmem %s812_s0, %s490_s22  ;;  %s402_s12 = sshll.u32 %s190_s11, 4  ;;  %s772_s12 = int_to_ptr.vmem [resolvable:$true] %s402_s12 }
  0x19   : > { %v469_v11 = vld.sshfl [vmem:[%s195_s6] sm:$0x33 pattern:$0x76325410]  ;;  %s389_s22 = scalar_lea.sflag [#allocation3], %s188_s30  ;;  %s568_s23 = scalar_lea.vmem %s772_s12, 64 }
  0x1a   : > { %v245_v12 = vcombine.high %v469_v11, %v469_v11  ;;  %p569_p11 = scmp.ne.s32.totalorder %s772_s12, %s568_s23  ;;  %s572_s27 = sshll.u32 %s632_s19, 4  ;;  %s573_s27 = int_to_ptr.vmem [resolvable:$false] %s572_s27 }
  0x1b   : > { %498 = vmatpush3.bf16.msra.mxu0 %v559_v7  ;;  %s574_s28 = scalar_lea.vmem %s573_s27, 128  ;;  %p575_p0 = scmp.lt.s32.totalorder %s772_s12, %s573_s27 }
  0x1c   : > { %499 = vmatprep.subr.bf16.mxu0 %v560_v8  ;;  %376 = vmatprep.mubr.bf16.mxu0 %v245_v12  ;;  %p570_p12 = pnand %p569_p11, %p696_p5  ;;  %p576_p1 = scmp.lt.s32.totalorder %s574_s28, %s568_s23 }
  0x1e   : > { %p571_p13 = pneg %p570_p12  ;;  %p577_p2 = por %p576_p1, %p575_p0 }
  0x1f   : > { %500 = vmatpush3.bf16.msra.mxu0 %v561_v9 }
  0x20   : > { %501 = vmatprep.subr.bf16.mxu0 %v562_v10  ;;  %p578_p3 = pnand %p577_p2, %p571_p13 }
  0x23   : > { %502 = vmatpush3.bf16.msra.mxu0 %v563_v13 }
  0x24   : > { %503 = vmatprep.subr.bf16.mxu0 %v564_v14 }
  0x27   : > { %504 = vmatpush3.bf16.msra.mxu0 %v565_v15 }
  0x28   : > { %505 = vmatprep.subr.bf16.mxu0 %v566_v16 }
  0x2b   : > { %506 = vmatpush3.bf16.msra.mxu0 %v567_v17 }
  0x2e   : > { %377 = vmatmul.mubr.bf16.vlgmr.msra.gmra.mrb[0].mxu0 %v469_v11 }
 0x101   : > { %v507_v18 = vpop.f32.mrb[0].mxu0 }
 0x102   : > { %v508_v20 = vpop.f32.mrb[1].mxu0 }
 0x103   : > { %v509_v21 = vadd.f32 %v508_v20, %v507_v18  ;;  %v510_v22 = vpop.f32.mrb[2].mxu0 }
 0x104   : > { %v511_v24 = vpop.f32.mrb[3].mxu0 }
 0x105   : > { %v379_v25 = vadd.f32 %v509_v21, %v468_v19 }
 0x107   : > { %v385_v26 = vadd.f32 %v384_v23, %v379_v25 }
 0x109   : > { %387 = vst.msk [vmem:[%s190_s11] sm:$0xf] %vm386_vm0, %v385_v26 }
 0x10a   : > { %581 = shalt.err (!%p578_p3)
}
 0x10b   : > { %s582_s29 = scalar_lea.hbm %s770_s20, 64  ;;  %s586_s6 = scalar_lea.hbm %s816_s4, 128 }
 0x10c   : > { %p583_p4 = scmp.ne.s32.totalorder %s770_s20, %s582_s29  ;;  %p587_p9 = scmp.lt.u32.totalorder %s770_s20, %s816_s4 }
 0x10d   : > { %p588_p10 = scmp.lt.u32.totalorder %s586_s6, %s582_s29  ;;  %p590_p12 = scmp.lt.u32.totalorder %s582_s29, %s770_s20 }
 0x10e   : > { %p584_p7 = pnand %p583_p4, %p696_p5 }
 0x10f   : > { %p589_p11 = por %p588_p10, %p587_p9 }
 0x110   : > { %p585_p8 = pneg %p584_p7 }
 0x111   : > { %p591_p13 = por %p590_p12, %p589_p11 }
 0x113   : > { %p592_p0 = pnand %p591_p13, %p585_p8 }
 0x115   : > { %595 = shalt.err (!%p592_p0)
}
 0x116   : > { %513 = dma.vmem_to_hbm [thread:$0]  (%p696_p5), %s772_s12, 64, %s770_s20, %s389_s22  }
 0x117 PF: > { %p519_p1 = scmp.ge.s32.totalorder %s630_s18, 2  ;;  %s414_s9 = sand.u32 1, %s618_s15  }
 0x118   : > { %s415_s10 = scalar_lea.sflag [#allocation3], %s414_s9 }
 0x119   : > { %p516_p2 = pnand %p519_p1, %p700_p6 }
 0x11b   : > { %613 = dma.done.wait (!%p516_p2), %s415_s10, 64  }
 0x11c   : > { %615 = vsyncadd (!%p516_p2), %s415_s10, 4294967232  ;;  %p14_p3 = scmp.ge.s32.totalorder %s683_s21, 4   ;;  %s819_s15 = smov %s622_s16 }
 0x11d   : > { %s820_s16 = smov %s626_s17  ;;  %s821_s17 = smov %s694_s24 }
 0x11e   : > { %s822_s18 = smov %s683_s21  ;;  %16 = sbr.rel (!%p14_p3) target bundleno = 3 (0x3), region = 71 }
 0x125   :  { %420 = vsyncpa [#allocation3], 1 }
 0x126   :  { %422 = vsyncpa [#allocation3 + $0x1], 1 }

</bundles_post_ra>
